<compile_context>
chip_gen: v7x
topology: tpu7x:2x2x1
jax: 0.10.0
libtpu: 0.0.40
codegen_flags: <defaults>
</compile_context>

<pallas_src>
import functools
import math

import jax
import jax.numpy as jnp
from jax.experimental import pallas as pl
from jax.experimental.pallas import tpu as pltpu


def _pos_enc_add_kernel(pe_ref, x_ref, o_ref):
    # pe_ref: (1, r_tile, L)  -- VMEM-resident across the inner (batch) steps.
    # x_ref / o_ref: (b_tile, r_tile, L).
    # Plain VPU add; when b_tile == 1 shapes match exactly (no broadcast).
    o_ref[...] = x_ref[...] + pe_ref[...]


@functools.lru_cache(maxsize=32)
def _pe_table_cached(T, D, dtype_name):
    """Sinusoidal table for positions [0, T); mirrors the PyTorch buffer.

    Angles are computed in float32 (like PyTorch).  The final cast to the
    activation dtype only differs from PyTorch's f32-buffer add for sub-f32
    activations (bf16/f16), where the delta is one rounding of pe.
    """
    position = jnp.arange(T, dtype=jnp.float32)[:, None]                  # (T, 1)
    div_term = jnp.exp(
        jnp.arange(0, D, 2, dtype=jnp.float32) * (-math.log(10000.0) / D)
    )[None, :]                                                            # (1, ceil(D/2))
    angles = position * div_term
    # interleave: pe[:, 0::2] = sin, pe[:, 1::2] = cos
    pe = jnp.stack([jnp.sin(angles), jnp.cos(angles)], axis=-1).reshape(T, -1)
    return pe[:, :D].astype(dtype_name)


def _lane_layout(T, D):
    """Pick (R, L) with R*L == T*D and L a multiple of 128 when possible."""
    if D % 128 == 0:
        return T, D
    total = T * D
    if total % 128 == 0:
        for L in (1024, 512, 384, 256, 128):
            if total % L == 0:
                return total // L, L
    # Fallback: keep the original last dim (full-extent block; correct but
    # stores are partially masked when D is not a multiple of 128).
    return T, D


def _tpu_vmem_bytes():
    try:
        return int(pltpu.get_tpu_info().vmem_capacity_bytes)
    except Exception:
        return 64 << 20  # conservative: assume the smallest (v7x) VMEM


def _choose_tiles(B, R, L, itemsize, tile_cap_bytes):
    """Row tile (multiple of 8 or full extent) + optional batch folding."""
    row_bytes = L * itemsize
    rows_budget = max(1, tile_cap_bytes // row_bytes)
    if rows_budget >= R:
        r_tile = R                                    # full extent: always legal
    else:
        r_tile = min(R, max(8, (rows_budget // 8) * 8))  # sublane-aligned tile
    n_r = pl.cdiv(R, r_tile)

    b_tile = 1
    if n_r == 1:
        # Per-batch tile is below budget -> fold batch elements so each grid
        # step moves MiB-scale DMAs instead of one tiny copy per batch element.
        tile_bytes = r_tile * row_bytes
        b_tile = min(B, max(1, tile_cap_bytes // max(1, tile_bytes)))
        if b_tile >= B and B >= 2:
            b_tile = pl.cdiv(B, 2)   # keep >=2 parallel steps (v7x megacore)
    n_b = pl.cdiv(B, b_tile)
    return b_tile, r_tile, n_b, n_r


def positional_encoding(x, max_position=5000, *, donate_x=False,
                        xla_fastpath_bytes=1 << 20):
    """x: (B, T, D) -> x + PE[:T, :] broadcast over batch (module forward)."""
    B, T, D = x.shape
    assert T <= max_position, "sequence length exceeds max_position"

    dtype = jnp.dtype(x.dtype)
    pe = _pe_table_cached(T, D, dtype.name)                 # (T, D), cached

    total_bytes = B * T * D * dtype.itemsize
    if total_bytes <= xla_fastpath_bytes and not donate_x:
        # Tiny problem: fixed pallas_call/pipeline startup dominates -> fused XLA add.
        return x + pe[None, :, :]

    # Lane-dense view of the per-batch (T, D) slab; pure layout plumbing.
    R, L = _lane_layout(T, D)
    x2 = x.reshape(B, R, L)
    pe2 = pe.reshape(1, R, L)

    vmem_cap = _tpu_vmem_bytes()
    small_vmem = vmem_cap <= (64 << 20)                     # v7x
    tile_cap = (4 << 20) if small_vmem else (8 << 20)       # per-tile byte budget
    b_tile, r_tile, n_b, n_r = _choose_tiles(B, R, L, dtype.itemsize, tile_cap)

    # Live VMEM: double-buffered x + out + pe tiles, plus headroom.
    x_tile_bytes = b_tile * r_tile * L * dtype.itemsize
    pe_tile_bytes = r_tile * L * dtype.itemsize
    vmem_soft_cap = (48 << 20) if small_vmem else (96 << 20)
    vmem_limit = int(max(8 << 20,
                         min(4 * x_tile_bytes + 2 * pe_tile_bytes + (4 << 20),
                             vmem_soft_cap)))

    out = pl.pallas_call(
        _pos_enc_add_kernel,
        out_shape=jax.ShapeDtypeStruct((B, R, L), x.dtype),
        grid_spec=pltpu.PrefetchScalarGridSpec(
            num_scalar_prefetch=0,
            # r outer, b inner -> pe's block index is constant across the
            # inner (batch) steps, so its tile is not re-DMA'd per batch.
            grid=(n_r, n_b),
            in_specs=[
                pl.BlockSpec((1, r_tile, L), lambda r, b: (0, r, 0)),        # pe
                pl.BlockSpec((b_tile, r_tile, L), lambda r, b: (b, r, 0)),   # x
            ],
            out_specs=pl.BlockSpec((b_tile, r_tile, L), lambda r, b: (b, r, 0)),
        ),
        compiler_params=pltpu.CompilerParams(
            dimension_semantics=("parallel", "parallel"),
            vmem_limit_bytes=vmem_limit,
        ),
        # When the caller donates x (e.g. jit(..., donate_argnums=0)), the add
        # is done in place: no separate (B, T, D) output HBM allocation.
        input_output_aliases=({1: 0} if donate_x else {}),
    )(pe2, x2)
    return out.reshape(B, T, D)


def _positional_encoding_ref(x, max_position=5000):
    """Pure-JAX reference mirroring the PyTorch buffer construction."""
    B, T, D = x.shape
    position = jnp.arange(0, max_position, dtype=jnp.float32)[:, None]
    div_term = jnp.exp(
        jnp.arange(0, D, 2, dtype=jnp.float32) * (-math.log(10000.0) / D)
    )[None, :]
    pe = jnp.zeros((max_position, D), dtype=jnp.float32)
    pe = pe.at[:, 0::2].set(jnp.sin(position * div_term))
    pe = pe.at[:, 1::2].set(jnp.cos(position * div_term))
    return x + pe[None, :T, :].astype(x.dtype)


if __name__ == "__main__":
    key = jax.random.PRNGKey(0)

    # Shape consistent with the module's (B, T, d_model) forward.
    B, T, D = 2, 8, 32
    x = jax.random.normal(key, (B, T, D), dtype=jnp.float32)

    # Force the Pallas path (fastpath disabled) and check against the reference.
    y = jax.block_until_ready(positional_encoding(x, xla_fastpath_bytes=0))
    y_ref = _positional_encoding_ref(x)
    assert y.shape == (B, T, D)
    assert jnp.allclose(y, y_ref, atol=1e-5, rtol=1e-5)

    # Lane-dense reshape path (D not a multiple of 128).
    B2, T2, D2 = 2, 64, 96
    x2 = jax.random.normal(jax.random.PRNGKey(1), (B2, T2, D2), dtype=jnp.float32)
    y2 = jax.block_until_ready(positional_encoding(x2, xla_fastpath_bytes=0))
    assert jnp.allclose(y2, _positional_encoding_ref(x2), atol=1e-5, rtol=1e-5)

    # D already a multiple of 128; batch folding / megacore split engages.
    B3, T3, D3 = 2, 128, 256
    x3 = jax.random.normal(jax.random.PRNGKey(2), (B3, T3, D3), dtype=jnp.float32)
    y3 = jax.block_until_ready(positional_encoding(x3, xla_fastpath_bytes=0))
    assert jnp.allclose(y3, _positional_encoding_ref(x3), atol=1e-5, rtol=1e-5)

    # Default call exercises the tiny-shape XLA fastpath (same semantics).
    y_fast = jax.block_until_ready(positional_encoding(x))
    assert jnp.allclose(y_fast, y_ref, atol=1e-5, rtol=1e-5)

    # In-place (aliased output) variant under jit with a donated input buffer.
    donated_fn = jax.jit(
        lambda a: positional_encoding(a, donate_x=True, xla_fastpath_bytes=0),
        donate_argnums=0)
    x3_copy = jnp.array(x3)  # separate buffer we are allowed to donate
    y3_inplace = jax.block_until_ready(donated_fn(x3_copy))
    assert jnp.allclose(y3_inplace, y3, atol=1e-5, rtol=1e-5)

    print("KERNEL_OK")
</pallas_src>

<mosaic_0001>
module attributes {stable_mosaic.version = 11 : i64} {
  func.func @_pos_enc_add_kernel(%arg0: i32, %arg1: i32, %arg2: memref<1x1x256xf32, #tpu.memory_space<vmem>>, %arg3: memref<1x1x256xf32, #tpu.memory_space<vmem>>, %arg4: memref<1x1x256xf32, #tpu.memory_space<vmem>>) attributes {dimension_semantics = [#tpu.dimension_semantics<parallel>, #tpu.dimension_semantics<parallel>], iteration_bounds = array<i64: 1, 2>, scalar_prefetch = 0 : i64, scratch_operands = 0 : i64, tpu.core_type = #tpu.core_type<tc>, window_params = [{transform_indices = @transform_0, window_bounds = array<i64: 1, 1, 256>}, {transform_indices = @transform_1, window_bounds = array<i64: 1, 1, 256>}, {transform_indices = @transform_2, window_bounds = array<i64: 1, 1, 256>}]} {
    %c0 = arith.constant 0 : index
    %c0_0 = arith.constant 0 : index
    %c0_1 = arith.constant 0 : index
    %0 = vector.load %arg3[%c0, %c0_0, %c0_1] : memref<1x1x256xf32, #tpu.memory_space<vmem>>, vector<1x1x256xf32>
    %c0_2 = arith.constant 0 : index
    %c0_3 = arith.constant 0 : index
    %c0_4 = arith.constant 0 : index
    %1 = vector.load %arg2[%c0_2, %c0_3, %c0_4] : memref<1x1x256xf32, #tpu.memory_space<vmem>>, vector<1x1x256xf32>
    %2 = arith.addf %0, %1 : vector<1x1x256xf32>
    %c0_5 = arith.constant 0 : index
    %c0_6 = arith.constant 0 : index
    %c0_7 = arith.constant 0 : index
    %3 = vector.load %arg4[%c0_5, %c0_6, %c0_7] : memref<1x1x256xf32, #tpu.memory_space<vmem>>, vector<1x1x256xf32>
    tpu.vector_store %arg4[%c0_5, %c0_6, %c0_7], %2 {strides = array<i32>} : memref<1x1x256xf32, #tpu.memory_space<vmem>>, vector<1x1x256xf32>,
    return
  }
  func.func @transform_0(%arg0: i32, %arg1: i32) -> (i32, i32, i32) {
    %c0_i32 = arith.constant 0 : i32
    %c0_i32_0 = arith.constant 0 : i32
    %c0_i32_1 = arith.constant 0 : i32
    return %c0_i32, %arg0, %c0_i32_0 : i32, i32, i32
  }
  func.func @transform_1(%arg0: i32, %arg1: i32) -> (i32, i32, i32) {
    %c0_i32 = arith.constant 0 : i32
    %c0_i32_0 = arith.constant 0 : i32
    return %arg1, %arg0, %c0_i32 : i32, i32, i32
  }
  func.func @transform_2(%arg0: i32, %arg1: i32) -> (i32, i32, i32) {
    %c0_i32 = arith.constant 0 : i32
    %c0_i32_0 = arith.constant 0 : i32
    return %arg1, %arg0, %c0_i32 : i32, i32, i32
  }
}

</mosaic_0001>

<bundles_post_ra>
// kernel: tpu_custom_call.1
= control target key start
LH: loop header
LB: loop body
LE: loop exit
PB: predicated region body
PF: predicated region fallthrough
CT: control target
= control target key end

     0   :  { %7 = vsyncpa [#allocation3], 0  ;;  %s794_s0 = inlined_call_operand.hbm [shape: f32[1,1,256], index: 0, kind: input, shape index: {}]   ;;  %s795_s1 = inlined_call_operand.hbm [shape: f32[2,1,256], index: 1, kind: input, shape index: {}]   ;;  %s796_s2 = inlined_call_operand.hbm [shape: f32[2,1,256], index: 2, kind: output, shape index: {}]  }
   0x1   :  { %8 = vsyncpa [#allocation6], 0 }
   0x2   :  { %10 = vsyncpa [#allocation6 + $0x1], 0 }
   0x3   :  { %11 = vsyncpa [#allocation4], 0 }
   0x4   :  { %13 = vsyncpa [#allocation4 + $0x1], 0  ;;  %s578_s9 = smov 0   ;;  %s580_s10 = smov 0  }
   0x5   :  { %s582_s11 = smov 0   ;;  %s584_s12 = smov 0  }
   0x6   :  { %s586_s13 = smov 0   ;;  %s588_s14 = smov 0  }
   0x7 LB: > { %s322_s15 = sadd.s32 4294967295, %s558_s14   ;;  %s323_s16 = sadd.s32 4294967294, %s558_s14   ;;  %s558_s14 = sphi %s588_s14, %s19_s14   ;;  %s554_s13 = sphi %s586_s13, %s821_s13   ;;  %s550_s12 = sphi %s584_s12, %s820_s12   ;;  %s546_s11 = sphi %s582_s11, %s819_s11   ;;  %s542_s10 = sphi %s580_s10, %s818_s10   ;;  %s538_s9 = sphi %s578_s9, %s817_s9  }
   0x8   : > { %p79_p0 = scmp.ne.s32.totalorder %s542_s10, %s538_s9  ;;  %p612_p1 = scmp.eq.s32.totalorder %s322_s15, 0 }
   0x9   : > { %p616_p2 = scmp.eq.s32.totalorder %s322_s15, 1  ;;  %p111_p3 = scmp.eq.s32.totalorder %s323_s16, 1 }
   0xa   : > { %s801_s17 = scalar_select %p612_p1, 1, 0 }
   0xb   : > { %s802_s18 = scalar_select %p616_p2, 1, 0 }
   0xc   : > { %p622_p4 = por %p612_p1, %p79_p0  ;;  %p324_p5 = scmp.ge.s32.totalorder %s558_s14, 1 }
   0xd   : > { %p627_p6 = por %p111_p3, %p79_p0  ;;  %p118_p7 = scmp.lt.s32.totalorder %s558_s14, 3 }
   0xe   : > { %s803_s19 = scalar_select %p622_p4, 1, 0 }
   0xf   : > { %s804_s20 = scalar_select %p627_p6, 1, 0 }
  0x10   : > { %p632_p8 = pnand %p324_p5, %p118_p7  ;;  %s560_s22 = smov [#allocation2]  }
  0x11   : > { %s134_s23 = sshll.u32 %s560_s22, 4  ;;  %s28_s25 = sadd.s32 1, %s554_s13  ;;  %s135_s23 = int_to_ptr.vmem [resolvable:$true] %s134_s23 }
  0x12   : > { %s805_s21 = scalar_select %p632_p8, 1, 0 }
  0x13   : > { %p349_p10 = pneg %p632_p8  ;;  %s66_s26 = sadd.s32 1, %s546_s11 }
  0x14   : > { %p647_p12 = scmp.ge.s32.totalorder %s28_s25, 2  ;;  %s414_s30 = scalar_lea.hbm %s794_s0, 32 }
  0x15   : > { %p641_p11 = pnand %p349_p10, %p612_p1  ;;  %p415_p13 = scmp.ne.s32.totalorder %s794_s0, %s414_s30 }
  0x16   : > { %s807_s27 = scalar_select %p647_p12, 1, 0 }
  0x17   : > { %p416_p0 = pneg %p641_p11  ;;  %p421_p7 = scmp.lt.u32.totalorder %s414_s30, %s794_s0 }
  0x19   : > { %p417_p3 = pnand %p416_p0, %p415_p13 }
  0x1b   : > { %p418_p5 = pneg %p417_p3 }
  0x1d   : > { %p423_p10 = pnand %p421_p7, %p418_p5 }
  0x1f   : > { %426 = shalt.err (!%p423_p10)
}
  0x20   : > { %s427_s7 = scalar_lea.vmem %s135_s23, 32  ;;  %p435_p1 = scmp.lt.s32.totalorder %s135_s23, %s135_s23 }
  0x21   : > { %p428_p9 = scmp.ne.s32.totalorder %s135_s23, %s427_s7  ;;  %p436_p8 = scmp.lt.s32.totalorder %s427_s7, %s427_s7 }
  0x23   : > { %p430_p6 = pnand %p428_p9, %p416_p0  ;;  %p437_p2 = por %p436_p8, %p435_p1 }
  0x25   : > { %p431_p4 = pneg %p430_p6 }
  0x27   : > { %p438_p12 = pnand %p437_p2, %p431_p4 }
  0x29   : > { %441 = shalt.err (!%p438_p12)
}
  0x2a   : > { %352 = dma.hbm_to_vmem [thread:$0]  (!%p641_p11), %s794_s0, 32, %s135_s23, [#allocation3]  }
  0x2b   : > { %p808_p1 = scmp.ne.s32.totalorder %s807_s27, 0  ;;  %p73_p2 = scmp.ne.s32.totalorder %s546_s11, %s542_s10 }
  0x2c   : > { %p74_p4 = scmp.eq.s32.totalorder %s558_s14, 0  ;;  %p362_p6 = scmp.lt.s32.totalorder %s558_s14, 2 }
  0x2d   : > { %s823_s25 = smov (%p808_p1, %s28_s25), 0  ;;  %p809_p12 = scmp.ne.s32.totalorder %s802_s18, 0 }
  0x2e   : > { %s61_s16 = ssub.s32 %s554_s13, %s823_s25  ;;  %p75_p9 = por %p74_p4, %p73_p2 }
  0x2f   : > { %p64_p8 = scmp.eq.s32.totalorder %s61_s16, 0  ;;  %p679_p13 = por %p809_p12, %p73_p2 }
  0x30   : > { %s145_s24 = sand.u32 1, %s546_s11   ;;  %s339_s27 = sshll.u32 %s554_s13, 5 }
  0x31   : > { %s687_s28 = scalar_select %p64_p8, %s546_s11, %s66_s26  }
  0x32   : > { %s327_s23 = sshll.u32 %s145_s24, 1  ;;  %s693_s3 = scalar_lea.hbm %s795_s1, %s339_s27 }
  0x33   : > { %s149_s18 = scalar_lea.vmem [#allocation5], %s327_s23  ;;  %p697_p11 = pnand %p362_p6, %p75_p9 }
  0x34   : > { %s159_s4 = sshll.u32 %s149_s18, 4  ;;  %s146_s26 = scalar_lea.sflag [#allocation6], %s145_s24  ;;  %s695_s4 = int_to_ptr.vmem [resolvable:$true] %s159_s4 }
  0x35   : > { %s442_s6 = scalar_lea.hbm %s693_s3, 32  ;;  %p444_p3 = pneg %p697_p11 }
  0x36   : > { %p443_p0 = scmp.ne.s32.totalorder %s693_s3, %s442_s6  ;;  %s447_s15 = scalar_lea.hbm %s795_s1, 64 }
  0x37   : > { %p448_p10 = scmp.lt.u32.totalorder %s693_s3, %s795_s1  ;;  %p449_p1 = scmp.lt.u32.totalorder %s447_s15, %s442_s6 }
  0x38   : > { %p445_p5 = pnand %p444_p3, %p443_p0  ;;  %p451_p4 = scmp.lt.u32.totalorder %s442_s6, %s693_s3 }
  0x39   : > { %p450_p2 = por %p449_p1, %p448_p10 }
  0x3a   : > { %p446_p7 = pneg %p445_p5 }
  0x3b   : > { %p452_p6 = por %p451_p4, %p450_p2 }
  0x3d   : > { %p453_p8 = pnand %p452_p6, %p446_p7 }
  0x3f   : > { %456 = shalt.err (!%p453_p8)
}
  0x40   : > { %s457_s24 = scalar_lea.vmem %s695_s4, 32  ;;  %s561_s27 = smov [#allocation5]  }
  0x41   : > { %p458_p9 = scmp.ne.s32.totalorder %s695_s4, %s457_s24  ;;  %s462_s29 = sshll.u32 %s561_s27, 4  ;;  %s463_s29 = int_to_ptr.vmem [resolvable:$false] %s462_s29 }
  0x42   : > { %s464_s30 = scalar_lea.vmem %s463_s29, 64  ;;  %p465_p5 = scmp.lt.s32.totalorder %s695_s4, %s463_s29 }
  0x43   : > { %p460_p12 = pnand %p458_p9, %p444_p3  ;;  %p466_p10 = scmp.lt.s32.totalorder %s464_s30, %s457_s24 }
  0x45   : > { %p461_p0 = pneg %p460_p12  ;;  %p467_p1 = por %p466_p10, %p465_p5 }
  0x47   : > { %p468_p2 = pnand %p467_p1, %p461_p0 }
  0x49   : > { %471 = shalt.err (!%p468_p2)
}
  0x4a   : > { %356 = dma.hbm_to_vmem [thread:$0]  (!%p697_p11), %s693_s3, 32, %s695_s4, %s146_s26  }
  0x4b   : > { %p812_p7 = scmp.ne.s32.totalorder %s805_s21, 0 }
  0x4c   : > { %p813_p3 = scmp.ne.s32.totalorder (!%p812_p7), %s801_s17, 0 }
  0x4d   : > { %168 = sbr.rel (%p812_p7) target bundleno = 114 (0x72), region = 28 }
  0x54   : > { %525 = dma.done.wait (%p813_p3), [#allocation3], 32  }
  0x55   : > { %527 = vsyncadd (%p813_p3), [#allocation3], 4294967264  ;;  %s733_s18 = sand.u32 1, %s542_s10   ;;  %p814_p4 = scmp.ne.s32.totalorder %s803_s19, 0 }
  0x56   : > { %s332_s6 = sshll.u32 %s733_s18, 1  ;;  %s175_s5 = scalar_lea.sflag [#allocation6], %s733_s18 }
  0x57   : > { %s178_s7 = scalar_lea.vmem [#allocation5], %s332_s6 }
  0x58   : > { %529 = dma.done.wait (%p814_p4), %s175_s5, 32  }
  0x59   : > { %531 = vsyncadd (%p814_p4), %s175_s5, 4294967264  ;;  %v202_v0 = vlaneseq  ;;  %s198_s17 = scalar_lea.vmem [#allocation7], %s332_s6  ;;  %s340_s3 = sshll.u32 %s550_s12, 5  ;;  %v199_v1 = vld [vmem:[%s178_s7] sm:$0x3] }
  0x5a   : > { %s224_s21 = sshll.u32 %s198_s17, 4  ;;  %v200_v2 = vld [vmem:[#allocation2] sm:$0x3]  ;;  %s747_s19 = scalar_lea.hbm %s796_s2, %s340_s3  ;;  %s742_s21 = int_to_ptr.vmem [resolvable:$true] %s224_s21 }
  0x5b   : > { %vm204_vm0 = vcmp.lt.s32.totalorder %v202_v0, 256  ;;  %v201_v3 = vadd.f32 %v200_v2, %v199_v1  ;;  %s208_s8 = scalar_lea.sflag [#allocation4], %s733_s18  ;;  %s472_s15 = scalar_lea.vmem %s742_s21, 32 }
  0x5c   : > { %p473_p11 = scmp.ne.s32.totalorder %s742_s21, %s472_s15  ;;  %s562_s12 = smov [#allocation7]  }
  0x5d   : > { %206 = vst.msk [vmem:[%s198_s17] sm:$0x3] %vm204_vm0, %v201_v3  ;;  %s476_s16 = sshll.u32 %s562_s12, 4  ;;  %s477_s16 = int_to_ptr.vmem [resolvable:$false] %s476_s16 }
  0x5e   : > { %p474_p6 = pnand %p473_p11, %p679_p13  ;;  %s478_s23 = scalar_lea.vmem %s477_s16, 64 }
  0x5f   : > { %p479_p9 = scmp.lt.s32.totalorder %s742_s21, %s477_s16  ;;  %p480_p12 = scmp.lt.s32.totalorder %s478_s23, %s472_s15 }
  0x60   : > { %p475_p8 = pneg %p474_p6 }
  0x61   : > { %p481_p0 = por %p480_p12, %p479_p9 }
  0x63   : > { %p482_p5 = pnand %p481_p0, %p475_p8 }
  0x65   : > { %485 = shalt.err (!%p482_p5)
}
  0x66   : > { %s486_s24 = scalar_lea.hbm %s747_s19, 32  ;;  %s490_s30 = scalar_lea.hbm %s796_s2, 64 }
  0x67   : > { %p487_p10 = scmp.ne.s32.totalorder %s747_s19, %s486_s24  ;;  %p491_p7 = scmp.lt.u32.totalorder %s747_s19, %s796_s2 }
  0x68   : > { %p492_p3 = scmp.lt.u32.totalorder %s490_s30, %s486_s24  ;;  %p494_p11 = scmp.lt.u32.totalorder %s486_s24, %s747_s19 }
  0x69   : > { %p488_p1 = pnand %p487_p10, %p679_p13 }
  0x6a   : > { %p493_p4 = por %p492_p3, %p491_p7 }
  0x6b   : > { %p489_p2 = pneg %p488_p1 }
  0x6c   : > { %p495_p6 = por %p494_p11, %p493_p4 }
  0x6e   : > { %p496_p8 = pnand %p495_p6, %p489_p2 }
  0x70   : > { %499 = shalt.err (!%p496_p8)
}
  0x71   : > { %347 = dma.vmem_to_hbm [thread:$0]  (%p679_p13), %s742_s21, 32, %s747_s19, %s208_s8  }
  0x72 PF: > { %s236_s5 = sand.u32 1, %s538_s9   ;;  %p815_p9 = scmp.ne.s32.totalorder %s804_s20, 0 }
  0x73   : > { %p816_p12 = scmp.ge.s32.totalorder %s558_s14, 2  ;;  %s237_s7 = scalar_lea.sflag [#allocation4], %s236_s5 }
  0x75   : > { %p358_p0 = pnand %p816_p12, %p815_p9 }
  0x77   : > { %533 = dma.done.wait (!%p358_p0), %s237_s7, 32  }
  0x78   : > { %535 = vsyncadd (!%p358_p0), %s237_s7, 4294967264  ;;  %s19_s14 = sadd.s32 1, %s558_s14   ;;  %s817_s9 = smov %s542_s10 }
  0x79   : > { %p16_p5 = scmp.ge.s32.totalorder %s19_s14, 4   ;;  %s818_s10 = smov %s546_s11 }
  0x7a   : > { %s819_s11 = smov %s687_s28  ;;  %s820_s12 = smov %s554_s13 }
  0x7b   : > { %s821_s13 = smov %s823_s25  ;;  %18 = sbr.rel (!%p16_p5) target bundleno = 7 (0x7), region = 79 }
  0x82   :  { %242 = vsyncpa [#allocation3], 1 }
  0x83   :  { %244 = vsyncpa [#allocation3 + $0x1], 1 }
  0x84   :  { %245 = vsyncpa [#allocation6], 1 }
  0x85   :  { %247 = vsyncpa [#allocation6 + $0x1], 1 }
  0x86   :  { %248 = vsyncpa [#allocation4], 1 }
  0x87   :  { %250 = vsyncpa [#allocation4 + $0x1], 1 }

</bundles_post_ra>
